<compile_context>
chip_gen: v5e
topology: v5e:2x2
jax: 0.10.0
libtpu: 0.0.40
codegen_flags: <defaults>
</compile_context>

<pallas_src>
import numpy as np

import jax
import jax.numpy as jnp
from jax.experimental import pallas as pl
from jax.experimental.pallas import tpu as pltpu


def _fft_processor_kernel(x_ref, w1_ref, b_ref, w2_ref, o_ref):
    """One (tm, L) tile of packed rows; fused weights stay VMEM-resident.

    x_ref : (tm, L)   packed input rows (L = pack * Cp lanes), native dtype
    w1_ref: (L, 2L)   block-diag fused (DFT -> Linear) weight, GEMM dtype
    b_ref : (1, 2L)   tiled bias, f32
    w2_ref: (2L, L)   block-diag fused inverse-DFT weight (1/C folded), GEMM dtype
    o_ref : (tm, L)   packed output rows, native dtype
    """
    x = x_ref[...]
    # MXU matmuls in the GEMM dtype (bf16 by default) with f32 accumulation;
    # all elementwise math stays f32 (v5e's VPU has no bf16 VALU).
    h = jnp.dot(x.astype(w1_ref.dtype), w1_ref[...],
                preferred_element_type=jnp.float32)
    h = jnp.maximum(h + b_ref[...], 0.0)   # bias + ReLU; Dropout == identity (eval)
    y = jnp.dot(h.astype(w2_ref.dtype), w2_ref[...],
                preferred_element_type=jnp.float32)
    o_ref[...] = (x.astype(jnp.float32) + y).astype(o_ref.dtype)


def _fused_weights(weight, bias, C, Cp, pack, gemm_dtype):
    """Host-side (numpy float64) fused-weight construction, done once."""
    w = np.asarray(jax.device_get(weight), dtype=np.float64)          # (out, in)
    b = np.asarray(jax.device_get(bias), dtype=np.float64).reshape(1, C)

    n = np.arange(C, dtype=np.int64)
    nk = np.mod(np.outer(n, n), C)              # integer mod -> angles in [0, 2*pi)
    ang = (2.0 * np.pi / C) * nk.astype(np.float64)
    cosm, sinm = np.cos(ang), np.sin(ang)

    wt = w.T                                                        # (in, out)
    w1 = np.concatenate([cosm @ wt, -(sinm @ wt)], axis=1)          # (C, 2C)
    b2 = np.concatenate([b, b], axis=1)                             # (1, 2C)
    w2 = np.concatenate([cosm, -sinm], axis=0) / C                  # (2C, C)

    if Cp != C:  # lane-density channel padding; padded channels stay exactly 0
        w1p = np.zeros((Cp, 2 * Cp)); w1p[:C, :2 * C] = w1; w1 = w1p
        w2p = np.zeros((2 * Cp, Cp)); w2p[:2 * C, :C] = w2; w2 = w2p
        b2p = np.zeros((1, 2 * Cp)); b2p[:, :2 * C] = b2; b2 = b2p

    if pack > 1:  # block-diagonal expansion so packed rows stay independent
        eye = np.eye(pack)
        w1 = np.kron(eye, w1)                                       # (L, 2L)
        w2 = np.kron(eye, w2)                                       # (2L, L)
        b2 = np.tile(b2, (1, pack))                                 # (1, 2L)

    return (jnp.asarray(w1, dtype=gemm_dtype),
            jnp.asarray(b2, dtype=jnp.float32),
            jnp.asarray(w2, dtype=gemm_dtype))


def make_fft_processor(weight, bias, *, gemm_dtype=jnp.bfloat16, tm_max=8192):
    """weight: (C, C) PyTorch Linear layout (out, in); bias: (C,).
    Returns apply(x) for x of shape (B, S, C)."""
    C = int(weight.shape[0])

    # Lane-density packing: choose Cp so L = pack*Cp is ALWAYS a multiple of 128
    # (unmasked 128-lane loads/stores -- the biggest single Pallas lever).
    if C <= 128:
        Cp = 1
        while Cp < C:
            Cp *= 2            # next power of two; divides 128
        pack = 128 // Cp
    else:
        Cp = ((C + 127) // 128) * 128
        pack = 1
    L = pack * Cp

    w1_bd, b_bd, w2_bd = _fused_weights(weight, bias, C, Cp, pack, gemm_dtype)
    w_bytes = (w1_bd.size * w1_bd.dtype.itemsize
               + w2_bd.size * w2_bd.dtype.itemsize
               + b_bd.size * b_bd.dtype.itemsize)
    # TODO(synk): for very large C (>~1536) the O(C^2) fused weights alone
    # approach v7x's 64 MiB VMEM; an un-fused / K-tiled kernel is needed there.

    @jax.jit
    def apply(x):
        B, S, _ = x.shape
        M = B * S
        x2 = x.reshape(M, C)

        # Pack `pack` logical rows into one lane-dense row of width L.  Only a
        # small alignment pad (rows -> multiple of 8*pack, channels -> Cp);
        # there is NO grid-boundary padding -- the row grid is non-divisible
        # and Pallas masks the edge block's stores (garbage rows never land).
        mr = -(-M // pack)                    # packed rows needed
        mr8 = ((mr + 7) // 8) * 8             # sublane alignment of packed view
        Mp = mr8 * pack
        if Mp != M or Cp != C:
            x2 = jnp.pad(x2, ((0, Mp - M), (0, Cp - C)))
        xp = x2.reshape(mr8, L)               # contiguous reshape: free

        # Row-tile size: as large as a conservative VMEM budget allows (amortize
        # the ~0.35us/step pipeline overhead), multiple of 8 sublanes, and at
        # most ~half the rows so ("parallel",) can shard across both v7x cores.
        row_bytes = 2 * L * x.dtype.itemsize          # one input + one output row
        tile_budget = max(4 << 20, (28 << 20) - 2 * w_bytes)
        tm_cap = max(8, (tile_budget // (2 * row_bytes)) // 8 * 8)
        tm_half = max(8, ((-(-mr8 // 2)) + 7) // 8 * 8)
        tm = max(8, min(tm_max, tm_cap, tm_half, mr8))
        grid_m = -(-mr8 // tm)

        # Explicit VMEM budget: 2 buffers x (in + out) tiles + resident weights.
        vmem_limit = int(min(2 * tm * row_bytes + 2 * w_bytes + (2 << 20), 48 << 20))

        out = pl.pallas_call(
            _fft_processor_kernel,
            out_shape=jax.ShapeDtypeStruct((mr8, L), x.dtype),
            grid=(grid_m,),
            in_specs=[
                # If profiling shows exposed DMA, sweep pipeline_mode=pl.Buffered(3) here.
                pl.BlockSpec((tm, L), lambda i: (i, 0)),
                pl.BlockSpec((L, 2 * L), lambda i: (0, 0)),     # VMEM-resident
                pl.BlockSpec((1, 2 * L), lambda i: (0, 0)),     # VMEM-resident
                pl.BlockSpec((2 * L, L), lambda i: (0, 0)),     # VMEM-resident
            ],
            out_specs=pl.BlockSpec((tm, L), lambda i: (i, 0)),
            compiler_params=pltpu.CompilerParams(
                dimension_semantics=("parallel",),   # megacore sharding on v7x
                vmem_limit_bytes=vmem_limit,
            ),
        )(xp, w1_bd, b_bd, w2_bd)

        # Metadata-only when no padding was needed; a small slice otherwise.
        return out.reshape(Mp, Cp)[:M, :C].reshape(B, S, C)

    return apply


def fft_processor(x, weight, bias, **kwargs):
    """Convenience one-shot wrapper."""
    return make_fft_processor(weight, bias, **kwargs)(x)


def _reference(x, weight, bias):
    xf = jnp.fft.fft(x, axis=-1)
    rp = jax.nn.relu(jnp.real(xf) @ weight.T + bias)
    ip = jax.nn.relu(jnp.imag(xf) @ weight.T + bias)
    res = xf + (rp + 1j * ip)
    return jnp.real(jnp.fft.ifft(res, axis=-1))


if __name__ == "__main__":
    key = jax.random.PRNGKey(0)
    kx, kw, kb = jax.random.split(key, 3)

    B, S, C = 2, 8, 16  # (batch, seq_len, channels); input_size = C
    x = jax.random.normal(kx, (B, S, C), dtype=jnp.float32)

    # Deterministic synthetic parameters for nn.Linear(C, C).
    bound = 1.0 / (C ** 0.5)
    weight = jax.random.uniform(kw, (C, C), jnp.float32, -bound, bound)
    bias = jax.random.uniform(kb, (C,), jnp.float32, -bound, bound)

    # TODO(synk): Dropout is treated as identity (eval-mode forward parity only).
    ref = _reference(x, weight, bias)

    # 1) Exact-algebra check: f32 GEMM path must match the FFT reference tightly.
    out_f32 = jax.block_until_ready(
        make_fft_processor(weight, bias, gemm_dtype=jnp.float32)(x))
    assert out_f32.shape == (B, S, C)
    err_f32 = float(jnp.max(jnp.abs(out_f32 - ref)))
    assert jnp.allclose(out_f32, ref, atol=1e-4, rtol=1e-4), err_f32

    # 2) Default performance path: bf16 MXU operands, f32 accumulation/elementwise.
    apply_fn = make_fft_processor(weight, bias)        # fused weights built once
    out = jax.block_until_ready(apply_fn(x))
    assert out.shape == (B, S, C)
    err = float(jnp.max(jnp.abs(out - ref)))
    scale = float(jnp.max(jnp.abs(ref)))
    assert err <= 5e-2 * scale + 5e-2, (err, scale)    # bf16-level accuracy budget

    print("KERNEL_OK")
</pallas_src>

<mosaic_0001>
module attributes {stable_mosaic.version = 11 : i64} {
  func.func @_fft_processor_kernel(%arg0: i32, %arg1: memref<8x128xf32, #tpu.memory_space<vmem>>, %arg2: memref<128x256xf32, #tpu.memory_space<vmem>>, %arg3: memref<1x256xf32, #tpu.memory_space<vmem>>, %arg4: memref<256x128xf32, #tpu.memory_space<vmem>>, %arg5: memref<8x128xf32, #tpu.memory_space<vmem>>) attributes {dimension_semantics = [#tpu.dimension_semantics<parallel>], iteration_bounds = array<i64: 1>, scalar_prefetch = 0 : i64, scratch_operands = 0 : i64, tpu.core_type = #tpu.core_type<tc>, window_params = [{transform_indices = @transform_0, window_bounds = array<i64: 8, 128>}, {pipeline_mode = #tpu.pipeline_mode<synchronous>, transform_indices = @transform_1, window_bounds = array<i64: 128, 256>}, {pipeline_mode = #tpu.pipeline_mode<synchronous>, transform_indices = @transform_2, window_bounds = array<i64: 1, 256>}, {pipeline_mode = #tpu.pipeline_mode<synchronous>, transform_indices = @transform_3, window_bounds = array<i64: 256, 128>}, {transform_indices = @transform_4, window_bounds = array<i64: 8, 128>}]} {
    %c0 = arith.constant 0 : index
    %c0_0 = arith.constant 0 : index
    %0 = vector.load %arg1[%c0, %c0_0] : memref<8x128xf32, #tpu.memory_space<vmem>>, vector<8x128xf32>
    %c0_1 = arith.constant 0 : index
    %c0_2 = arith.constant 0 : index
    %1 = vector.load %arg2[%c0_1, %c0_2] : memref<128x256xf32, #tpu.memory_space<vmem>>, vector<128x256xf32>
    %cst = arith.constant dense<0.000000e+00> : vector<8x256xf32>
    %2 = tpu.matmul %0, %1, %cst {dimension_numbers = #tpu.dot_dimension_numbers<[1], [0], [0], [1], [0, 0, 1, 1], [], []>} : vector<8x128xf32>, vector<128x256xf32>, vector<8x256xf32> -> vector<8x256xf32>
    %c0_3 = arith.constant 0 : index
    %c0_4 = arith.constant 0 : index
    %3 = vector.load %arg3[%c0_3, %c0_4] : memref<1x256xf32, #tpu.memory_space<vmem>>, vector<1x256xf32>
    %4 = vector.broadcast %3 : vector<1x256xf32> to vector<8x256xf32>
    %5 = arith.addf %2, %4 : vector<8x256xf32>
    %cst_5 = arith.constant 0.000000e+00 : f32
    %6 = vector.broadcast %cst_5 : f32 to vector<8x256xf32>
    %7 = arith.maximumf %5, %6 : vector<8x256xf32>
    %c0_6 = arith.constant 0 : index
    %c0_7 = arith.constant 0 : index
    %8 = vector.load %arg4[%c0_6, %c0_7] : memref<256x128xf32, #tpu.memory_space<vmem>>, vector<256x128xf32>
    %cst_8 = arith.constant dense<0.000000e+00> : vector<8x128xf32>
    %9 = tpu.matmul %7, %8, %cst_8 {dimension_numbers = #tpu.dot_dimension_numbers<[1], [0], [0], [1], [0, 0, 1, 1], [], []>} : vector<8x256xf32>, vector<256x128xf32>, vector<8x128xf32> -> vector<8x128xf32>
    %10 = arith.addf %0, %9 : vector<8x128xf32>
    %c0_9 = arith.constant 0 : index
    %c0_10 = arith.constant 0 : index
    %11 = vector.load %arg5[%c0_9, %c0_10] : memref<8x128xf32, #tpu.memory_space<vmem>>, vector<8x128xf32>
    tpu.vector_store %arg5[%c0_9, %c0_10], %10 {strides = array<i32>} : memref<8x128xf32, #tpu.memory_space<vmem>>, vector<8x128xf32>,
    return
  }
  func.func @transform_0(%arg0: i32) -> (i32, i32) {
    %c0_i32 = arith.constant 0 : i32
    %c0_i32_0 = arith.constant 0 : i32
    return %arg0, %c0_i32 : i32, i32
  }
  func.func @transform_1(%arg0: i32) -> (i32, i32) {
    %c0_i32 = arith.constant 0 : i32
    %c0_i32_0 = arith.constant 0 : i32
    %c0_i32_1 = arith.constant 0 : i32
    return %c0_i32, %c0_i32_0 : i32, i32
  }
  func.func @transform_2(%arg0: i32) -> (i32, i32) {
    %c0_i32 = arith.constant 0 : i32
    %c0_i32_0 = arith.constant 0 : i32
    %c0_i32_1 = arith.constant 0 : i32
    return %c0_i32, %c0_i32_0 : i32, i32
  }
  func.func @transform_3(%arg0: i32) -> (i32, i32) {
    %c0_i32 = arith.constant 0 : i32
    %c0_i32_0 = arith.constant 0 : i32
    %c0_i32_1 = arith.constant 0 : i32
    return %c0_i32, %c0_i32_0 : i32, i32
  }
  func.func @transform_4(%arg0: i32) -> (i32, i32) {
    %c0_i32 = arith.constant 0 : i32
    %c0_i32_0 = arith.constant 0 : i32
    return %arg0, %c0_i32 : i32, i32
  }
}

</mosaic_0001>

<bundles_post_ra>
// kernel: apply.1
= control target key start
LH: loop header
LB: loop body
LE: loop exit
PB: predicated region body
PF: predicated region fallthrough
CT: control target
= control target key end

     0   :  { %9 = vsyncpa [#allocation3], 0  ;;  %s314_s0 = inlined_call_operand.vmem [shape: f32[8,128], index: 0, kind: input, shape index: {}]   ;;  %s315_s1 = inlined_call_operand.hbm [shape: f32[128,256], index: 1, kind: input, shape index: {}]   ;;  %s316_s2 = inlined_call_operand.vmem [shape: f32[1,256], index: 2, kind: input, shape index: {}]   ;;  %s317_s3 = inlined_call_operand.hbm [shape: f32[256,128], index: 3, kind: input, shape index: {}]   ;;  %s318_s4 = inlined_call_operand.vmem [shape: f32[8,128], index: 4, kind: output, shape index: {}]  }
   0x1   :  { %s17_s17 = sshll.u32 %s315_s1, 4  ;;  %s18_s17 = int_to_ptr.hbm [resolvable:$true] %s17_s17 }
   0x2   :  { %10 = vsyncpa [#allocation5], 0  ;;  %s268_s18 = smov [#allocation2]   ;;  %s32_s22 = sshll.u32 %s317_s3, 4  ;;  %s33_s22 = int_to_ptr.hbm [resolvable:$true] %s32_s22 }
   0x3   :  { %s19_s19 = sshll.u32 %s268_s18, 4  ;;  %s269_s23 = smov 256   ;;  %s20_s19 = int_to_ptr.vmem [resolvable:$true] %s19_s19 }
   0x4   :  { %s270_s24 = smov 16   ;;  %s271_s25 = smov [#allocation4]  }
   0x5   :  { %25 = dma.hbm_to_vmem [thread:$0]  %s18_s17, 4096, %s20_s19, [#allocation3], %s269_s23, %s269_s23, %s270_s24  }
   0x6   :  { %s34_s26 = sshll.u32 %s271_s25, 4  ;;  %s272_s27 = smov 128   ;;  %s35_s26 = int_to_ptr.vmem [resolvable:$true] %s34_s26 }
   0x7   :  { %s273_s28 = smov 8  }
   0x8   :  { %40 = dma.hbm_to_vmem [thread:$0]  %s33_s22, 4096, %s35_s26, [#allocation5], %s272_s27, %s272_s27, %s273_s28  }
   0x9   :  { %264 = dma.done.wait [#allocation3], 4096  }
   0xa   :  { %265 = vsyncadd [#allocation3], 4294963200 }
   0xb   :  { %266 = dma.done.wait [#allocation5], 4096  }
   0xc   :  { %267 = vsyncadd [#allocation5], 4294963200  ;;  %v80_v0 = vld [vmem:[#allocation2 + $0xf0] sm:$0xff]  ;;  %v81_v1 = vld [vmem:[#allocation2 + $0xf8] sm:$0xff] }
   0xd   :  { %v78_v2 = vld [vmem:[#allocation2 + $0xe0] sm:$0xff]  ;;  %88 = vmatpush.msra.mxu0 %v80_v0  ;;  %108 = vmatpush.msra.mxu1 %v81_v1  ;;  %v79_v3 = vld [vmem:[#allocation2 + $0xe8] sm:$0xff]  ;;  %v76_v4 = vld [vmem:[#allocation2 + $0xd0] sm:$0xff] }
   0xe   :  { %v77_v5 = vld [vmem:[#allocation2 + $0xd8] sm:$0xff]  ;;  %v74_v6 = vld [vmem:[#allocation2 + $0xc0] sm:$0xff]  ;;  %v75_v7 = vld [vmem:[#allocation2 + $0xc8] sm:$0xff] }
   0xf   :  { %89 = vmatpush.msra.mxu0 %v78_v2  ;;  %109 = vmatpush.msra.mxu1 %v79_v3  ;;  %v72_v8 = vld [vmem:[#allocation2 + $0xb0] sm:$0xff]  ;;  %v73_v9 = vld [vmem:[#allocation2 + $0xb8] sm:$0xff]  ;;  %v70_v10 = vld [vmem:[#allocation2 + $0xa0] sm:$0xff] }
  0x10   :  { %v71_v11 = vld [vmem:[#allocation2 + $0xa8] sm:$0xff]  ;;  %v68_v12 = vld [vmem:[#allocation2 + $0x90] sm:$0xff]  ;;  %v69_v13 = vld [vmem:[#allocation2 + $0x98] sm:$0xff] }
  0x11   :  { %90 = vmatpush.msra.mxu0 %v76_v4  ;;  %110 = vmatpush.msra.mxu1 %v77_v5  ;;  %v145_v14 = vld [vmem:[#allocation4 + $0x78] sm:$0xff]  ;;  %v144_v16 = vld [vmem:[#allocation4 + $0x70] sm:$0xff]  ;;  %v66_v17 = vld [vmem:[#allocation2 + $0x80] sm:$0xff] }
  0x12   :  { %v161_v15 = vld [vmem:[#allocation4 + $0xf8] sm:$0xff]  ;;  %v67_v18 = vld [vmem:[#allocation2 + $0x88] sm:$0xff]  ;;  %162 = vmatpush.msra.mxu2 %v145_v14  ;;  %v160_v19 = vld [vmem:[#allocation4 + $0xf0] sm:$0xff] }
  0x13   :  { %91 = vmatpush.msra.mxu0 %v74_v6  ;;  %111 = vmatpush.msra.mxu1 %v75_v7  ;;  %v143_v20 = vld [vmem:[#allocation4 + $0x68] sm:$0xff]  ;;  %v64_v22 = vld [vmem:[#allocation2 + $0x70] sm:$0xff]  ;;  %v65_v23 = vld [vmem:[#allocation2 + $0x78] sm:$0xff] }
  0x14   :  { %182 = vmatpush.msra.mxu3 %v161_v15  ;;  %v159_v21 = vld [vmem:[#allocation4 + $0xe8] sm:$0xff]  ;;  %163 = vmatpush.msra.mxu2 %v144_v16  ;;  %v142_v24 = vld [vmem:[#allocation4 + $0x60] sm:$0xff]  ;;  %v141_v28 = vld [vmem:[#allocation4 + $0x58] sm:$0xff] }
  0x15   :  { %92 = vmatpush.msra.mxu0 %v72_v8  ;;  %112 = vmatpush.msra.mxu1 %v73_v9  ;;  %v158_v25 = vld [vmem:[#allocation4 + $0xe0] sm:$0xff]  ;;  %v63_v27 = vld [vmem:[#allocation2 + $0x68] sm:$0xff]  ;;  %v157_v29 = vld [vmem:[#allocation4 + $0xd8] sm:$0xff] }
  0x16   :  { %183 = vmatpush.msra.mxu3 %v160_v19  ;;  %v62_v26 = vld [vmem:[#allocation2 + $0x60] sm:$0xff]  ;;  %164 = vmatpush.msra.mxu2 %v143_v20  ;;  %v60_v30 = vld [vmem:[#allocation2 + $0x50] sm:$0xff]  ;;  %v61_v31 = vld [vmem:[#allocation2 + $0x58] sm:$0xff] }
  0x17   :  { %93 = vmatpush.msra.mxu0 %v70_v10  ;;  %113 = vmatpush.msra.mxu1 %v71_v11  ;;  %v140_v32 = vld [vmem:[#allocation4 + $0x50] sm:$0xff]  ;;  %v58_v34 = vld [vmem:[#allocation2 + $0x40] sm:$0xff]  ;;  %v59_v35 = vld [vmem:[#allocation2 + $0x48] sm:$0xff] }
  0x18   :  { %184 = vmatpush.msra.mxu3 %v159_v21  ;;  %165 = vmatpush.msra.mxu2 %v142_v24  ;;  %v156_v33 = vld [vmem:[#allocation4 + $0xd0] sm:$0xff]  ;;  %v139_v36 = vld [vmem:[#allocation4 + $0x48] sm:$0xff]  ;;  %v57_v39 = vld [vmem:[#allocation2 + $0x38] sm:$0xff] }
  0x19   :  { %94 = vmatpush.msra.mxu0 %v68_v12  ;;  %114 = vmatpush.msra.mxu1 %v69_v13  ;;  %v155_v37 = vld [vmem:[#allocation4 + $0xc8] sm:$0xff]  ;;  %v56_v38 = vld [vmem:[#allocation2 + $0x30] sm:$0xff]  ;;  %v138_v40 = vld [vmem:[#allocation4 + $0x40] sm:$0xff] }
  0x1a   :  { %185 = vmatpush.msra.mxu3 %v158_v25  ;;  %166 = vmatpush.msra.mxu2 %v141_v28  ;;  %v154_v41 = vld [vmem:[#allocation4 + $0xc0] sm:$0xff]  ;;  %v55_v43 = vld [vmem:[#allocation2 + $0x28] sm:$0xff]  ;;  %v137_v44 = vld [vmem:[#allocation4 + $0x38] sm:$0xff] }
  0x1b   :  { %95 = vmatpush.msra.mxu0 %v66_v17  ;;  %115 = vmatpush.msra.mxu1 %v67_v18  ;;  %v54_v42 = vld [vmem:[#allocation2 + $0x20] sm:$0xff]  ;;  %v153_v45 = vld [vmem:[#allocation4 + $0xb8] sm:$0xff]  ;;  %v52_v46 = vld [vmem:[#allocation2 + $0x10] sm:$0xff] }
  0x1c   :  { %186 = vmatpush.msra.mxu3 %v157_v29  ;;  %167 = vmatpush.msra.mxu2 %v140_v32  ;;  %v53_v47 = vld [vmem:[#allocation2 + $0x18] sm:$0xff]  ;;  %v136_v48 = vld [vmem:[#allocation4 + $0x30] sm:$0xff]  ;;  %v50_v50 = vld [vmem:[#allocation2] sm:$0xff] }
  0x1d   :  { %96 = vmatpush.msra.mxu0 %v64_v22  ;;  %116 = vmatpush.msra.mxu1 %v65_v23  ;;  %v152_v49 = vld [vmem:[#allocation4 + $0xb0] sm:$0xff]  ;;  %v51_v51 = vld [vmem:[#allocation2 + $0x8] sm:$0xff]  ;;  %v49_v52 = vld [vmem:[%s314_s0] sm:$0xff] }
  0x1e   :  { %187 = vmatpush.msra.mxu3 %v156_v33  ;;  %168 = vmatpush.msra.mxu2 %v139_v36  ;;  %v135_v53 = vld [vmem:[#allocation4 + $0x28] sm:$0xff]  ;;  %v134_v55 = vld [vmem:[#allocation4 + $0x20] sm:$0xff]  ;;  %v133_v57 = vld [vmem:[#allocation4 + $0x18] sm:$0xff] }
  0x1f   :  { %97 = vmatpush.msra.mxu0 %v62_v26  ;;  %117 = vmatpush.msra.mxu1 %v63_v27  ;;  %v151_v54 = vld [vmem:[#allocation4 + $0xa8] sm:$0xff]  ;;  %v150_v56 = vld [vmem:[#allocation4 + $0xa0] sm:$0xff]  ;;  %v149_v58 = vld [vmem:[#allocation4 + $0x98] sm:$0xff] }
  0x20   :  { %188 = vmatpush.msra.mxu3 %v155_v37  ;;  %169 = vmatpush.msra.mxu2 %v138_v40  ;;  %v132_v59 = vld [vmem:[#allocation4 + $0x10] sm:$0xff]  ;;  %v131_v61 = vld [vmem:[#allocation4 + $0x8] sm:$0xff]  ;;  %v130_v63 = vld [vmem:[#allocation4] sm:$0xff] }
  0x21   :  { %98 = vmatpush.msra.mxu0 %v60_v30  ;;  %118 = vmatpush.msra.mxu1 %v61_v31  ;;  %v148_v60 = vld [vmem:[#allocation4 + $0x90] sm:$0xff]  ;;  %v147_v62 = vld [vmem:[#allocation4 + $0x88] sm:$0xff]  ;;  %v146_v0 = vld [vmem:[#allocation4 + $0x80] sm:$0xff] }
  0x22   :  { %189 = vmatpush.msra.mxu3 %v154_v41  ;;  %170 = vmatpush.msra.mxu2 %v137_v44  ;;  %v82_v1 = vld [vmem:[%s316_s2] sm:$0x3] }
  0x23   :  { %99 = vmatpush.msra.mxu0 %v58_v34  ;;  %119 = vmatpush.msra.mxu1 %v59_v35  ;;  %v84_v2 = vperm.slane %v82_v1, 0  ;;  %v85_v3 = vperm.slane %v82_v1, 1 }
  0x24   :  { %190 = vmatpush.msra.mxu3 %v153_v45  ;;  %171 = vmatpush.msra.mxu2 %v136_v48 }
  0x25   :  { %100 = vmatpush.msra.mxu0 %v56_v38  ;;  %120 = vmatpush.msra.mxu1 %v57_v39 }
  0x26   :  { %191 = vmatpush.msra.mxu3 %v152_v49  ;;  %172 = vmatpush.msra.mxu2 %v135_v53 }
  0x27   :  { %101 = vmatpush.msra.mxu0 %v54_v42  ;;  %121 = vmatpush.msra.mxu1 %v55_v43 }
  0x28   :  { %192 = vmatpush.msra.mxu3 %v151_v54  ;;  %173 = vmatpush.msra.mxu2 %v134_v55 }
  0x29   :  { %102 = vmatpush.msra.mxu0 %v52_v46  ;;  %122 = vmatpush.msra.mxu1 %v53_v47 }
  0x2a   :  { %193 = vmatpush.msra.mxu3 %v150_v56  ;;  %174 = vmatpush.msra.mxu2 %v133_v57 }
  0x2b   :  { %103 = vmatpush.msra.mxu0 %v50_v50  ;;  %123 = vmatpush.msra.mxu1 %v51_v51 }
  0x2c   :  { %104 = vmatmul.f32.vlgmr.msra.gmra.mxu0 %v49_v52  ;;  %124 = vmatmul.f32.vlgmr.msra.gmra.mxu1 %v49_v52 }
  0x2d   :  { %194 = vmatpush.msra.mxu3 %v149_v58  ;;  %175 = vmatpush.msra.mxu2 %v132_v59 }
  0x2f   :  { %195 = vmatpush.msra.mxu3 %v148_v60  ;;  %176 = vmatpush.msra.mxu2 %v131_v61 }
  0x31   :  { %196 = vmatpush.msra.mxu3 %v147_v62  ;;  %177 = vmatpush.msra.mxu2 %v130_v63 }
  0x33   :  { %197 = vmatpush.msra.mxu3 %v146_v0 }
  0xa9   :  { %v105_v4 = vpop.f32.mrf.mxu0  ;;  %v125_v5 = vpop.f32.mrf.mxu1 }
  0xaa   :  { %v106_v6 = vadd.f32 %v105_v4, %v84_v2  ;;  %v126_v7 = vadd.f32 %v125_v5, %v85_v3 }
  0xac   :  { %v128_v8 = vmax.f32 %v106_v6, 0.0  ;;  %v129_v9 = vmax.f32 %v126_v7, 0.0 }
  0xae   :  { %178 = vmatmul.f32.vlgmr.msra.gmra.mxu2 %v128_v8  ;;  %198 = vmatmul.f32.vlgmr.msra.gmra.mxu3 %v129_v9 }
 0x131   :  { %v179_v10 = vpop.f32.mrf.mxu2  ;;  %v199_v11 = vpop.f32.mrf.mxu3 }
 0x132   :  { %v200_v12 = vadd.f32 %v199_v11, %v179_v10 }
 0x134   :  { %v202_v13 = vadd.f32 %v200_v12, %v49_v52 }
 0x136   :  { %203 = vst [vmem:[%s318_s4] sm:$0xff] %v202_v13 }
 0x137   :  { %208 = vsyncpa [#allocation3], 1 }
 0x138   :  { %209 = vsyncpa [#allocation5], 1 }

</bundles_post_ra>
